<compile_context>
chip_gen: v7x
topology: tpu7x:2x2x1
jax: 0.10.0
libtpu: 0.0.40
codegen_flags: <defaults>
</compile_context>

<pallas_src>
from functools import partial

import jax
import jax.numpy as jnp
from jax.experimental import pallas as pl
from jax.experimental.pallas import tpu as pltpu


def _classifier_kernel(x_ref, w_ref, b_ref, o_ref):
    # x_ref: (TB, F) f32, w_ref: (F, Cp) bf16, b_ref: (1, Cp) f32, o_ref: (TB, Cp) f32
    x_bf16 = x_ref[...].astype(jnp.bfloat16)          # in-register cast, hidden under DMA
    logits = jnp.dot(x_bf16, w_ref[...], preferred_element_type=jnp.float32)
    logits = logits + b_ref[...]                       # padded lanes carry -inf -> exp == 0
    m = jnp.max(logits, axis=-1, keepdims=True)
    e = jnp.exp(logits - m)
    denom = jnp.sum(e, axis=-1, keepdims=True)
    o_ref[...] = (e / denom).astype(o_ref.dtype)       # exact divide: rows sum to 1


def _round_up(x: int, m: int) -> int:
    return ((x + m - 1) // m) * m


def _tpu_vmem_capacity_bytes() -> int:
    """Per-core VMEM capacity; conservative (v7x-sized) fallback if unqueryable."""
    try:
        return int(pltpu.get_tpu_info().vmem_capacity_bytes)
    except Exception:
        return 64 << 20


def _choose_batch_tile(B: int, F: int, vmem_cap: int) -> int:
    """Batch tile TB for grid = cdiv(B, TB) (no host-side padding of x).

    x streams as f32 and is double-buffered (2 * TB * F * 4 bytes); keep that
    within ~3/8 of VMEM, leaving room for the resident bf16 weight, the f32
    output double-buffer, and compiler scratch.
    """
    if B <= 8:
        return B                       # single block; block dim == full array dim (allowed)
    budget = (vmem_cap * 3) // 8       # 24 MiB on v7x, 48 MiB on v5e/v6e
    tb = budget // (2 * 4 * max(F, 1))
    tb = max(8, min(tb, 1024))
    tb = (tb // 128) * 128 if tb >= 128 else (tb // 8) * 8
    # Guarantee >= 2 grid steps so the "parallel" batch axis can shard across
    # both TensorCores on v7x (negligible overhead on single-TC chips).
    tb = min(tb, _round_up(pl.cdiv(B, 2), 8))
    return max(8, tb)


def init_classifier_params(weight: jax.Array, bias: jax.Array):
    """Pad/cast Linear parameters once, outside the per-call path.

    weight: (F, n_classes) f32, bias: (n_classes,) f32.
    Returns (w_pad bf16 (F, C_pad), b_pad f32 (1, C_pad)) with C_pad = round_up(n_classes, 128)
    and -inf bias in padded lanes so softmax over them is exactly 0.
    """
    F, n_classes = weight.shape
    if n_classes < 2:
        raise ValueError("Number of classes must be at least 2.")
    C_pad = _round_up(n_classes, 128)
    w_pad = jnp.zeros((F, C_pad), dtype=jnp.bfloat16).at[:, :n_classes].set(
        weight.astype(jnp.bfloat16))
    b_pad = jnp.full((1, C_pad), -jnp.inf, dtype=jnp.float32).at[0, :n_classes].set(
        bias.astype(jnp.float32))
    return w_pad, b_pad


@partial(jax.jit, static_argnames=("n_classes",))
def classifier_forward(x_nchw: jax.Array, w_pad: jax.Array, b_pad: jax.Array,
                       *, n_classes: int) -> jax.Array:
    """x_nchw: (B, C, H, W) f32. Returns (B, n_classes) class probabilities."""
    B = x_nchw.shape[0]
    x_flat = x_nchw.reshape(B, -1)            # torch.flatten order; stays f32 (no extra pass)
    F, C_pad = w_pad.shape
    assert x_flat.shape[1] == F

    vmem_cap = _tpu_vmem_capacity_bytes()
    TB = _choose_batch_tile(B, F, vmem_cap)
    grid = (pl.cdiv(B, TB),)                  # ragged final block handled by Pallas

    out = pl.pallas_call(
        _classifier_kernel,
        out_shape=jax.ShapeDtypeStruct((B, C_pad), jnp.float32),
        grid_spec=pltpu.PrefetchScalarGridSpec(
            num_scalar_prefetch=0,
            grid=grid,
            in_specs=[
                pl.BlockSpec((TB, F), lambda i: (i, 0)),      # x tile, streamed (f32)
                pl.BlockSpec((F, C_pad), lambda i: (0, 0)),   # weight, resident (bf16)
                pl.BlockSpec((1, C_pad), lambda i: (0, 0)),   # bias, resident (f32)
            ],
            out_specs=pl.BlockSpec((TB, C_pad), lambda i: (i, 0)),
        ),
        compiler_params=pltpu.CompilerParams(
            dimension_semantics=("parallel",),
            vmem_limit_bytes=(vmem_cap * 3) // 4,             # 48 MiB v7x, 96 MiB v5e/v6e
        ),
    )(x_flat, w_pad, b_pad)

    return out[:, :n_classes]


if __name__ == "__main__":
    # Small, deterministic example consistent with a conv-style classifier input.
    B, C, H, W = 2, 4, 16, 16
    n_classes = 8            # must be >= 2 per the module contract
    F = C * H * W            # 1024 flattened features

    key = jax.random.PRNGKey(0)
    kx, kw, kb = jax.random.split(key, 3)
    x = jax.random.normal(kx, (B, C, H, W), dtype=jnp.float32)
    # deterministic "Linear" parameter init (synthetic, not a checkpoint)
    weight = jax.random.normal(kw, (F, n_classes), dtype=jnp.float32) * (1.0 / jnp.sqrt(F))
    bias = jax.random.normal(kb, (n_classes,), dtype=jnp.float32) * 0.01

    w_pad, b_pad = init_classifier_params(weight, bias)   # one-time param prep
    probs = classifier_forward(x, w_pad, b_pad, n_classes=n_classes)
    probs = jax.block_until_ready(probs)

    # sanity checks against a pure-JAX f32 reference (bf16 matmul => loose atol on probs)
    ref_logits = x.reshape(B, -1) @ weight + bias
    ref_probs = jax.nn.softmax(ref_logits, axis=-1)
    assert probs.shape == (B, n_classes)
    assert bool(jnp.allclose(jnp.sum(probs, axis=-1), 1.0, atol=1e-5))
    assert bool(jnp.allclose(probs, ref_probs, atol=3e-2))

    print("KERNEL_OK")
</pallas_src>

<mosaic_0001>
module attributes {stable_mosaic.version = 11 : i64} {
  func.func @_classifier_kernel(%arg0: i32, %arg1: memref<2x1024xf32, #tpu.memory_space<vmem>>, %arg2: memref<1024x128xbf16, #tpu.memory_space<vmem>>, %arg3: memref<1x128xf32, #tpu.memory_space<vmem>>, %arg4: memref<2x128xf32, #tpu.memory_space<vmem>>) attributes {dimension_semantics = [#tpu.dimension_semantics<parallel>], iteration_bounds = array<i64: 1>, scalar_prefetch = 0 : i64, scratch_operands = 0 : i64, tpu.core_type = #tpu.core_type<tc>, window_params = [{transform_indices = @transform_0, window_bounds = array<i64: 2, 1024>}, {pipeline_mode = #tpu.pipeline_mode<synchronous>, transform_indices = @transform_1, window_bounds = array<i64: 1024, 128>}, {pipeline_mode = #tpu.pipeline_mode<synchronous>, transform_indices = @transform_2, window_bounds = array<i64: 1, 128>}, {transform_indices = @transform_3, window_bounds = array<i64: 2, 128>}]} {
    %c0 = arith.constant 0 : index
    %c0_0 = arith.constant 0 : index
    %0 = vector.load %arg1[%c0, %c0_0] : memref<2x1024xf32, #tpu.memory_space<vmem>>, vector<2x1024xf32>
    %1 = arith.truncf %0 : vector<2x1024xf32> to vector<2x1024xbf16>
    %c0_1 = arith.constant 0 : index
    %c0_2 = arith.constant 0 : index
    %2 = vector.load %arg2[%c0_1, %c0_2] : memref<1024x128xbf16, #tpu.memory_space<vmem>>, vector<1024x128xbf16>
    %cst = arith.constant dense<0.000000e+00> : vector<2x128xf32>
    %3 = tpu.matmul %1, %2, %cst {dimension_numbers = #tpu.dot_dimension_numbers<[1], [0], [0], [1], [0, 0, 1, 1], [], []>} : vector<2x1024xbf16>, vector<1024x128xbf16>, vector<2x128xf32> -> vector<2x128xf32>
    %c0_3 = arith.constant 0 : index
    %c0_4 = arith.constant 0 : index
    %4 = vector.load %arg3[%c0_3, %c0_4] : memref<1x128xf32, #tpu.memory_space<vmem>>, vector<1x128xf32>
    %5 = vector.broadcast %4 : vector<1x128xf32> to vector<2x128xf32>
    %6 = arith.addf %3, %5 : vector<2x128xf32>
    %cst_5 = arith.constant dense<0xFF800000> : vector<2xf32>
    %7 = vector.multi_reduction <maximumf>, %6, %cst_5 [1] : vector<2x128xf32> to vector<2xf32>
    %8 = vector.shape_cast %7 : vector<2xf32> to vector<2x1xf32>
    %9 = vector.broadcast %8 : vector<2x1xf32> to vector<2x128xf32>
    %10 = arith.subf %6, %9 : vector<2x128xf32>
    %11 = math.exp %10 : vector<2x128xf32>
    %cst_6 = arith.constant dense<0.000000e+00> : vector<2xf32>
    %12 = vector.multi_reduction <add>, %11, %cst_6 [1] : vector<2x128xf32> to vector<2xf32>
    %13 = vector.shape_cast %12 : vector<2xf32> to vector<2x1xf32>
    %14 = vector.broadcast %13 : vector<2x1xf32> to vector<2x128xf32>
    %15 = arith.divf %11, %14 : vector<2x128xf32>
    %c0_7 = arith.constant 0 : index
    %c0_8 = arith.constant 0 : index
    %16 = vector.load %arg4[%c0_7, %c0_8] : memref<2x128xf32, #tpu.memory_space<vmem>>, vector<2x128xf32>
    tpu.vector_store %arg4[%c0_7, %c0_8], %15 {strides = array<i32>} : memref<2x128xf32, #tpu.memory_space<vmem>>, vector<2x128xf32>,
    return
  }
  func.func @transform_0(%arg0: i32) -> (i32, i32) {
    %c0_i32 = arith.constant 0 : i32
    %c0_i32_0 = arith.constant 0 : i32
    return %arg0, %c0_i32 : i32, i32
  }
  func.func @transform_1(%arg0: i32) -> (i32, i32) {
    %c0_i32 = arith.constant 0 : i32
    %c0_i32_0 = arith.constant 0 : i32
    %c0_i32_1 = arith.constant 0 : i32
    return %c0_i32, %c0_i32_0 : i32, i32
  }
  func.func @transform_2(%arg0: i32) -> (i32, i32) {
    %c0_i32 = arith.constant 0 : i32
    %c0_i32_0 = arith.constant 0 : i32
    %c0_i32_1 = arith.constant 0 : i32
    return %c0_i32, %c0_i32_0 : i32, i32
  }
  func.func @transform_3(%arg0: i32) -> (i32, i32) {
    %c0_i32 = arith.constant 0 : i32
    %c0_i32_0 = arith.constant 0 : i32
    return %arg0, %c0_i32 : i32, i32
  }
}

</mosaic_0001>

<bundles_post_ra>
// kernel: classifier_forward.1
= control target key start
LH: loop header
LB: loop body
LE: loop exit
PB: predicated region body
PF: predicated region fallthrough
CT: control target
= control target key end

     0   :  { %8 = vsyncpa [#allocation3], 0  ;;  %s1131_s0 = inlined_call_operand.vmem [shape: f32[2,1024], index: 0, kind: input, shape index: {}]   ;;  %s1132_s1 = inlined_call_operand.hbm [shape: bf16[1024,128], index: 1, kind: input, shape index: {}]   ;;  %s1133_s2 = inlined_call_operand.vmem [shape: f32[1,128], index: 2, kind: input, shape index: {}]   ;;  %s1134_s3 = inlined_call_operand.hbm [shape: f32[2,128], index: 3, kind: output, shape index: {}]  }
   0x1   :  { %9 = vsyncpa [#allocation4], 0  ;;  %s1067_s12 = smov [#allocation2]   ;;  %s1019_s16 = scalar_lea.hbm %s1132_s1, 8192 }
   0x2   :  { %s17_s13 = sshll.u32 %s1067_s12, 4  ;;  %p1020_p0 = scmp.ne.s32.totalorder %s1132_s1, %s1019_s16  ;;  %s18_s13 = int_to_ptr.vmem [resolvable:$true] %s17_s13 }
   0x3   :  { %p1023_p1 = scmp.lt.u32.totalorder %s1019_s16, %s1132_s1 }
   0x5   :  { %p1025_p2 = pnand %p1023_p1, %p1020_p0 }
   0x7   :  { %1028 = shalt.err (!%p1025_p2)
}
   0x8   :  { %s1029_s21 = scalar_lea.vmem %s18_s13, 8192  ;;  %p1034_p4 = scmp.lt.s32.totalorder %s18_s13, %s18_s13 }
   0x9   :  { %p1030_p3 = scmp.ne.s32.totalorder %s18_s13, %s1029_s21  ;;  %p1035_p5 = scmp.lt.s32.totalorder %s1029_s21, %s1029_s21 }
   0xb   :  { %p1036_p6 = por %p1035_p5, %p1034_p4 }
   0xd   :  { %p1037_p7 = pnand %p1036_p6, %p1030_p3 }
   0xf   :  { %1040 = shalt.err (!%p1037_p7)
}
  0x10   :  { %s1068_s22 = smov 64   ;;  %s1069_s23 = smov 4  }
  0x11   :  { %23 = dma.hbm_to_vmem [thread:$0]  %s1132_s1, 8192, %s18_s13, [#allocation3], %s1068_s22, %s1068_s22, %s1069_s23  }
  0x12   :  { %1063 = dma.done.wait [#allocation3], 8192  }
  0x13   :  { %1064 = vsyncadd [#allocation3], 4294959104  ;;  %v949_v0 = vld [vmem:[#allocation2 + $0x40] sm:$0xff]   ;;  %v953_v4 = vld [vmem:[#allocation2 + $0x48] sm:$0xff]   ;;  %v1070_v22 = vmov 1983009808   ;;  %v38_v24 = vlaneseq }
  0x14   :  { %v950_v1 = vld [vmem:[#allocation2 + $0xc0] sm:$0xff]   ;;  %856 = vmatprep.subr.bf16.mxu0 %v949_v0  ;;  %v954_v5 = vld [vmem:[#allocation2 + $0xc8] sm:$0xff]   ;;  %v957_v8 = vld [vmem:[#allocation2 + $0x50] sm:$0xff]   ;;  %v36_v23 = vunpack.c.l.s4 %v1070_v22  ;;  %vm763_vm0 = vcmask 1041408  }
  0x15   :  { %v951_v2 = vld [vmem:[#allocation2] sm:$0xff]   ;;  %878 = vmatprep.subr.bf16.mxu1 %v950_v1  ;;  %v955_v6 = vld [vmem:[#allocation2 + $0x8] sm:$0xff]   ;;  %v958_v9 = vld [vmem:[#allocation2 + $0xd0] sm:$0xff]   ;;  %v39_v30 = vshrl.u32 %v38_v24, 7 }
  0x16   :  { %v952_v3 = vld [vmem:[#allocation2 + $0x80] sm:$0xff]   ;;  %857 = vmatpush3.bf16.msra.mxu0 %v951_v2  ;;  %v956_v7 = vld [vmem:[#allocation2 + $0x88] sm:$0xff]   ;;  %v959_v10 = vld [vmem:[#allocation2 + $0x10] sm:$0xff]   ;;  %v37_v29 = vunpack.c.0.s8 %v36_v23 }
  0x17   :  { %879 = vmatpush3.bf16.msra.mxu1 %v952_v3  ;;  %858 = vmatprep.subr.bf16.mxu0 %v953_v4  ;;  %v960_v11 = vld [vmem:[#allocation2 + $0x90] sm:$0xff]   ;;  %v961_v12 = vld [vmem:[#allocation2 + $0x58] sm:$0xff]   ;;  %v965_v16 = vld [vmem:[#allocation2 + $0x60] sm:$0xff]  }
  0x18   :  { %880 = vmatprep.subr.bf16.mxu1 %v954_v5  ;;  %v962_v13 = vld [vmem:[#allocation2 + $0xd8] sm:$0xff]   ;;  %v966_v17 = vld [vmem:[#allocation2 + $0xe0] sm:$0xff]   ;;  %v969_v20 = vld [vmem:[#allocation2 + $0x68] sm:$0xff]   ;;  %v1104_v35 = vsub.s32 %v37_v29, %v39_v30 }
  0x19   :  { %v963_v14 = vld [vmem:[#allocation2 + $0x18] sm:$0xff]   ;;  %v967_v18 = vld [vmem:[#allocation2 + $0x20] sm:$0xff]   ;;  %v970_v21 = vld [vmem:[#allocation2 + $0xe8] sm:$0xff]  }
  0x1a   :  { %859 = vmatpush3.bf16.msra.mxu0 %v955_v6  ;;  %v964_v15 = vld [vmem:[#allocation2 + $0x98] sm:$0xff]   ;;  %v968_v19 = vld [vmem:[#allocation2 + $0xa0] sm:$0xff]   ;;  %v971_v25 = vld [vmem:[#allocation2 + $0x28] sm:$0xff]  }
  0x1b   :  { %881 = vmatpush3.bf16.msra.mxu1 %v956_v7  ;;  %860 = vmatprep.subr.bf16.mxu0 %v957_v8  ;;  %v972_v26 = vld [vmem:[#allocation2 + $0xa8] sm:$0xff]   ;;  %v973_v27 = vld [vmem:[#allocation2 + $0x70] sm:$0xff]   ;;  %v977_v33 = vld [vmem:[#allocation2 + $0x78] sm:$0xff]  }
  0x1c   :  { %882 = vmatprep.subr.bf16.mxu1 %v958_v9  ;;  %v974_v28 = vld [vmem:[#allocation2 + $0xf0] sm:$0xff]   ;;  %v978_v34 = vld [vmem:[#allocation2 + $0xf8] sm:$0xff]   ;;  %v30_v38 = vld [vmem:[%s1131_s0] sm:$0xff] }
  0x1d   :  { %v975_v31 = vld [vmem:[#allocation2 + $0x30] sm:$0xff]   ;;  %v979_v36 = vld [vmem:[#allocation2 + $0x38] sm:$0xff]   ;;  %v41_v39 = vrot.slane %v30_v38, %v1104_v35  ;;  %v34_v40 = vcombine.high %v30_v38, %v30_v38  ;;  %v982_v41 = vld [vmem:[#allocation2 + $0x140] sm:$0xff]  }
  0x1e   :  { %861 = vmatpush3.bf16.msra.mxu0 %v959_v10  ;;  %v976_v32 = vld [vmem:[#allocation2 + $0xb0] sm:$0xff]   ;;  %v980_v37 = vld [vmem:[#allocation2 + $0xb8] sm:$0xff]   ;;  %v983_v42 = vld [vmem:[#allocation2 + $0x1c0] sm:$0xff]  }
  0x1f   :  { %883 = vmatpush3.bf16.msra.mxu1 %v960_v11  ;;  %862 = vmatprep.subr.bf16.mxu0 %v961_v12  ;;  %v49_v43 = vcombine.high %v41_v39, %v41_v39  ;;  %v48_v44 = vrot.slane %v34_v40, %v1104_v35  ;;  %v76_v45 = vpack.c.bf16 %v41_v39, %v41_v39  ;;  %v984_v48 = vld [vmem:[#allocation2 + $0x100] sm:$0xff]   ;;  %v986_v50 = vld [vmem:[#allocation2 + $0x148] sm:$0xff]   ;;  %v990_v55 = vld [vmem:[#allocation2 + $0x150] sm:$0xff]  }
  0x20   :  { %884 = vmatprep.subr.bf16.mxu1 %v962_v13  ;;  %v985_v52 = vld [vmem:[#allocation2 + $0x180] sm:$0xff]   ;;  %v987_v53 = vld [vmem:[#allocation2 + $0x1c8] sm:$0xff]   ;;  %v991_v57 = vld [vmem:[#allocation2 + $0x1d0] sm:$0xff]  }
  0x21   :  { %v77_v46 = vpack.c.bf16 %v49_v43, %v49_v43  ;;  %v50_v47 = vcombine.high %v48_v44, %v48_v44  ;;  %v78_v49 = vpack.c.bf16 %v48_v44, %v48_v44  ;;  %v988_v54 = vld [vmem:[#allocation2 + $0x108] sm:$0xff]   ;;  %v992_v58 = vld [vmem:[#allocation2 + $0x110] sm:$0xff]   ;;  %v994_v59 = vld [vmem:[#allocation2 + $0x158] sm:$0xff]  }
  0x22   :  { %863 = vmatpush3.bf16.msra.mxu0 %v963_v14  ;;  %v989_v56 = vld [vmem:[#allocation2 + $0x188] sm:$0xff]   ;;  %v993_v60 = vld [vmem:[#allocation2 + $0x190] sm:$0xff]   ;;  %v995_v61 = vld [vmem:[#allocation2 + $0x1d8] sm:$0xff]  }
  0x23   :  { %885 = vmatpush3.bf16.msra.mxu1 %v964_v15  ;;  %864 = vmatprep.subr.bf16.mxu0 %v965_v16  ;;  %v79_v51 = vpack.c.bf16 %v50_v47, %v50_v47  ;;  %v996_v62 = vld [vmem:[#allocation2 + $0x118] sm:$0xff]   ;;  %v998_v63 = vld [vmem:[#allocation2 + $0x160] sm:$0xff]   ;;  %v1002_v3 = vld [vmem:[#allocation2 + $0x168] sm:$0xff]  }
  0x24   :  { %886 = vmatprep.subr.bf16.mxu1 %v966_v17  ;;  %635 = vmatprep.mubr.bf16.mxu0 %v77_v46  ;;  %v997_v0 = vld [vmem:[#allocation2 + $0x198] sm:$0xff]   ;;  %v999_v1 = vld [vmem:[#allocation2 + $0x1e0] sm:$0xff]   ;;  %v1003_v5 = vld [vmem:[#allocation2 + $0x1e8] sm:$0xff]  }
  0x25   :  { %675 = vmatprep.mubr.bf16.mxu1 %v79_v51  ;;  %v1000_v2 = vld [vmem:[#allocation2 + $0x120] sm:$0xff]   ;;  %v1004_v6 = vld [vmem:[#allocation2 + $0x128] sm:$0xff]   ;;  %v1006_v7 = vld [vmem:[#allocation2 + $0x170] sm:$0xff]  }
  0x26   :  { %865 = vmatpush3.bf16.msra.mxu0 %v967_v18  ;;  %v1001_v4 = vld [vmem:[#allocation2 + $0x1a0] sm:$0xff]   ;;  %v1005_v8 = vld [vmem:[#allocation2 + $0x1a8] sm:$0xff]   ;;  %v1007_v9 = vld [vmem:[#allocation2 + $0x1f0] sm:$0xff]  }
  0x27   :  { %887 = vmatpush3.bf16.msra.mxu1 %v968_v19  ;;  %866 = vmatprep.subr.bf16.mxu0 %v969_v20  ;;  %v1008_v10 = vld [vmem:[#allocation2 + $0x130] sm:$0xff]   ;;  %v1010_v11 = vld [vmem:[#allocation2 + $0x178] sm:$0xff]   ;;  %v31_v14 = vld [vmem:[%s1131_s0 + $0x8] sm:$0xff] }
  0x28   :  { %888 = vmatprep.subr.bf16.mxu1 %v970_v21  ;;  %v1009_v12 = vld [vmem:[#allocation2 + $0x1b0] sm:$0xff]   ;;  %v1011_v13 = vld [vmem:[#allocation2 + $0x1f8] sm:$0xff]   ;;  %v58_v16 = vrot.slane %v31_v14, %v1104_v35  ;;  %v51_v17 = vcombine.high %v31_v14, %v31_v14 }
  0x29   :  { %v1012_v15 = vld [vmem:[#allocation2 + $0x138] sm:$0xff]  }
  0x2a   :  { %867 = vmatpush3.bf16.msra.mxu0 %v971_v25  ;;  %v1013_v18 = vld [vmem:[#allocation2 + $0x1b8] sm:$0xff]   ;;  %v66_v19 = vcombine.high %v58_v16, %v58_v16  ;;  %v65_v20 = vrot.slane %v51_v17, %v1104_v35  ;;  %v80_v21 = vpack.c.bf16 %v58_v16, %v58_v16 }
  0x2b   :  { %889 = vmatpush3.bf16.msra.mxu1 %v972_v26  ;;  %868 = vmatprep.subr.bf16.mxu0 %v973_v27  ;;  %v791_v27 = vld [vmem:[%s1133_s2] ss:$0 sm:$0xff]  ;;  %s1071_s2 = smov [#allocation5]  }
  0x2c   :  { %890 = vmatprep.subr.bf16.mxu1 %v974_v28  ;;  %v81_v22 = vpack.c.bf16 %v66_v19, %v66_v19  ;;  %v67_v23 = vcombine.high %v65_v20, %v65_v20  ;;  %v82_v24 = vpack.c.bf16 %v65_v20, %v65_v20  ;;  %s782_s30 = sshll.u32 %s1071_s2, 4  ;;  %s783_s30 = int_to_ptr.vmem [resolvable:$true] %s782_s30 }
  0x2d   :  { %s1041_s4 = scalar_lea.vmem %s783_s30, 32  ;;  %p1046_p9 = scmp.lt.s32.totalorder %s783_s30, %s783_s30 }
  0x2e   :  { %869 = vmatpush3.bf16.msra.mxu0 %v975_v31  ;;  %v83_v25 = vpack.c.bf16 %v67_v23, %v67_v23  ;;  %p1042_p8 = scmp.ne.s32.totalorder %s783_s30, %s1041_s4  ;;  %p1047_p10 = scmp.lt.s32.totalorder %s1041_s4, %s1041_s4 }
  0x2f   :  { %891 = vmatpush3.bf16.msra.mxu1 %v976_v32  ;;  %870 = vmatprep.subr.bf16.mxu0 %v977_v33 }
  0x30   :  { %892 = vmatprep.subr.bf16.mxu1 %v978_v34  ;;  %p1048_p11 = por %p1047_p10, %p1046_p9 }
  0x32   :  { %871 = vmatpush3.bf16.msra.mxu0 %v979_v36  ;;  %p1049_p12 = pnand %p1048_p11, %p1042_p8 }
  0x33   :  { %893 = vmatpush3.bf16.msra.mxu1 %v980_v37  ;;  %900 = vmatprep.subr.bf16.mxu0 %v982_v41 }
  0x34   :  { %922 = vmatprep.subr.bf16.mxu1 %v983_v42 }
  0x35   :  { %636 = vmatmul.mubr.bf16.vlgmr.msra.gmra.mrb[0].mxu0 %v76_v45 }
  0x36   :  { %901 = vmatpush3.bf16.msra.mxu0 %v984_v48  ;;  %676 = vmatmul.mubr.bf16.vlgmr.msra.gmra.mrb[0].mxu1 %v78_v49 }
  0x37   :  { %902 = vmatprep.subr.bf16.mxu0 %v986_v50  ;;  %923 = vmatpush3.bf16.msra.mxu1 %v985_v52 }
  0x38   :  { %924 = vmatprep.subr.bf16.mxu1 %v987_v53  ;;  %715 = vmatprep.mubr.bf16.mxu0 %v81_v22 }
  0x39   :  { %755 = vmatprep.mubr.bf16.mxu1 %v83_v25 }
  0x3a   :  { %903 = vmatpush3.bf16.msra.mxu0 %v988_v54 }
  0x3b   :  { %904 = vmatprep.subr.bf16.mxu0 %v990_v55  ;;  %925 = vmatpush3.bf16.msra.mxu1 %v989_v56 }
  0x3c   :  { %926 = vmatprep.subr.bf16.mxu1 %v991_v57 }
  0x3e   :  { %905 = vmatpush3.bf16.msra.mxu0 %v992_v58 }
  0x3f   :  { %906 = vmatprep.subr.bf16.mxu0 %v994_v59  ;;  %927 = vmatpush3.bf16.msra.mxu1 %v993_v60 }
  0x40   :  { %928 = vmatprep.subr.bf16.mxu1 %v995_v61 }
  0x42   :  { %907 = vmatpush3.bf16.msra.mxu0 %v996_v62 }
  0x43   :  { %908 = vmatprep.subr.bf16.mxu0 %v998_v63  ;;  %929 = vmatpush3.bf16.msra.mxu1 %v997_v0 }
  0x44   :  { %930 = vmatprep.subr.bf16.mxu1 %v999_v1 }
  0x46   :  { %909 = vmatpush3.bf16.msra.mxu0 %v1000_v2 }
  0x47   :  { %910 = vmatprep.subr.bf16.mxu0 %v1002_v3  ;;  %931 = vmatpush3.bf16.msra.mxu1 %v1001_v4 }
  0x48   :  { %932 = vmatprep.subr.bf16.mxu1 %v1003_v5 }
  0x4a   :  { %911 = vmatpush3.bf16.msra.mxu0 %v1004_v6 }
  0x4b   :  { %912 = vmatprep.subr.bf16.mxu0 %v1006_v7  ;;  %933 = vmatpush3.bf16.msra.mxu1 %v1005_v8 }
  0x4c   :  { %934 = vmatprep.subr.bf16.mxu1 %v1007_v9 }
  0x4e   :  { %913 = vmatpush3.bf16.msra.mxu0 %v1008_v10 }
  0x4f   :  { %914 = vmatprep.subr.bf16.mxu0 %v1010_v11  ;;  %935 = vmatpush3.bf16.msra.mxu1 %v1009_v12 }
  0x50   :  { %936 = vmatprep.subr.bf16.mxu1 %v1011_v13 }
  0x52   :  { %915 = vmatpush3.bf16.msra.mxu0 %v1012_v15 }
  0x53   :  { %937 = vmatpush3.bf16.msra.mxu1 %v1013_v18 }
  0x55   :  { %716 = vmatmul.mubr.bf16.vlgmr.msra.gmra.mrb[4].mxu0 %v80_v21 }
  0x56   :  { %756 = vmatmul.mubr.bf16.vlgmr.msra.gmra.mrb[4].mxu1 %v82_v24 }
 0x108   :  { %v872_v26 = vpop.f32.mrb[0].mxu0 }
 0x109   :  { %v873_v28 = vpop.f32.mrb[1].mxu0  ;;  %v894_v29 = vpop.f32.mrb[0].mxu1 }
 0x10a   :  { %v874_v30 = vadd.f32 %v873_v28, %v872_v26  ;;  %v875_v31 = vpop.f32.mrb[2].mxu0  ;;  %v895_v32 = vpop.f32.mrb[1].mxu1 }
 0x10b   :  { %v876_v33 = vpop.f32.mrb[3].mxu0  ;;  %v896_v35 = vadd.f32 %v895_v32, %v894_v29  ;;  %v897_v36 = vpop.f32.mrb[2].mxu1 }
 0x10c   :  { %v638_v34 = vadd.f32 %v874_v30, %v791_v27  ;;  %v898_v37 = vpop.f32.mrb[3].mxu1 }
 0x10e   :  { %v678_v38 = vadd.f32 %v896_v35, %v638_v34 }
 0x128   :  { %v916_v39 = vpop.f32.mrb[4].mxu0 }
 0x129   :  { %v917_v40 = vpop.f32.mrb[5].mxu0  ;;  %v938_v41 = vpop.f32.mrb[4].mxu1 }
 0x12a   :  { %v918_v42 = vadd.f32 %v917_v40, %v916_v39  ;;  %v919_v43 = vpop.f32.mrb[6].mxu0  ;;  %v939_v44 = vpop.f32.mrb[5].mxu1 }
 0x12b   :  { %v920_v45 = vpop.f32.mrb[7].mxu0  ;;  %v940_v47 = vadd.f32 %v939_v44, %v938_v41  ;;  %v941_v48 = vpop.f32.mrb[6].mxu1 }
 0x12c   :  { %v718_v46 = vadd.f32 %v918_v42, %v678_v38  ;;  %v942_v49 = vpop.f32.mrb[7].mxu1 }
 0x12e   :  { %v758_v50 = vadd.f32 %v940_v47, %v718_v46 }
 0x130   :  { %v764_v51 = vsel %vm763_vm0, %v758_v50, -inf }
 0x131   :  { %765 = vmax.xlane.f32.xlu0 %v764_v51 }
 0x1be   :  { %v766_v52 = vpop.xlane.xlu0 %765 }
 0x1bf   :  { %v767_v53 = vsub.f32 %v758_v50, %v766_v52 }
 0x1c1   :  { %v768_v54 = vmul.f32 1.442695, %v767_v53 }
 0x1c3   :  { %1015 = vpow2.f32 %v768_v54 }
 0x1cd   :  { %v1016_v55 = vpop.eup %1015 }
 0x1ce   :  { %v770_v56 = vsel %vm763_vm0, %v1016_v55, 0.0 }
 0x1cf   :  { %771 = vadd.xlane.f32.xlu0 %v770_v56 }
 0x25c   :  { %v772_v57 = vpop.xlane.xlu0 %771 }
 0x25d   :  { %1017 = vrcp.f32 %v772_v57 }
 0x267   :  { %v1018_v58 = vpop.eup %1017 }
 0x268   :  { %v774_v59 = vmul.f32 %v1018_v58, %v1016_v55 }
 0x26a   :  { %775 = vst [vmem:[#allocation5] sm:$0x3] %v774_v59 }
 0x26b   :  { %1052 = shalt.err (!%p1049_p12)
}
 0x26c   :  { %s1053_s7 = scalar_lea.hbm %s1134_s3, 32 }
 0x26d   :  { %p1054_p13 = scmp.ne.s32.totalorder %s1134_s3, %s1053_s7  ;;  %p1057_p0 = scmp.lt.u32.totalorder %s1053_s7, %s1134_s3 }
 0x26f   :  { %p1059_p1 = pnand %p1057_p0, %p1054_p13 }
 0x271   :  { %1062 = shalt.err (!%p1059_p1)
}
 0x272   :  { %785 = dma.vmem_to_hbm [thread:$0]  %s783_s30, 32, %s1134_s3, [#allocation4]  }
 0x273   :  { %1065 = dma.done.wait [#allocation4], 32  }
 0x274   :  { %1066 = vsyncadd [#allocation4], 4294967264 }
 0x275   :  { %789 = vsyncpa [#allocation3], 1 }
 0x276   :  { %790 = vsyncpa [#allocation4], 1 }

</bundles_post_ra>
